<compile_context>
chip_gen: v7x
topology: tpu7x:2x2x1
jax: 0.10.0
libtpu: 0.0.40
codegen_flags: <defaults>
</compile_context>

<pallas_src>
import jax
import jax.numpy as jnp
from jax.experimental import pallas as pl
from jax.experimental.pallas import tpu as pltpu


OUT_PAD = 128  # lane-dense output width (q1 -> lane 0, q2 -> lane 1, rest zero)


# ---------------------------------------------------------------------------
# Kernel
# ---------------------------------------------------------------------------
def critic_kernel(obs_ref, act_ref,
                  w0o_ref, w0a_ref, b0_ref, g_ref, beta_ref,
                  w1_ref, b1_ref, w2_ref, b2_ref,
                  q_ref):
    mm_dtype = w1_ref.dtype  # matmul input dtype (f32 or bf16); accumulation is f32

    # ---- trunk: split Linear (obs / action halves of w0) -> LayerNorm -> Tanh ----
    h = jnp.dot(obs_ref[...], w0o_ref[...], preferred_element_type=jnp.float32)
    h = h + jnp.dot(act_ref[...], w0a_ref[...], preferred_element_type=jnp.float32)
    h = h + b0_ref[...]                                        # (TB, H) f32

    # LayerNorm: biased variance over the true hidden dim (matches PyTorch LN),
    # statistics / rsqrt / tanh in f32.
    mean = jnp.mean(h, axis=-1, keepdims=True)
    diff = h - mean
    var = jnp.mean(diff * diff, axis=-1, keepdims=True)
    hn = diff * jax.lax.rsqrt(var + 1e-5) * g_ref[...] + beta_ref[...]
    h = jnp.tanh(hn).astype(mm_dtype)                          # (TB, H)

    # ---- fused Q1/Q2 heads ----
    # Hidden layer of both heads in one matmul: w1 = [w1a | w1b]  -> (H, 2H)
    z = jnp.dot(h, w1_ref[...], preferred_element_type=jnp.float32) + b1_ref[...]
    z = jnp.maximum(z, 0.0).astype(mm_dtype)                   # (TB, 2H)

    # Block-diagonal, lane-padded output projection: w2 -> (2H, OUT_PAD)
    #   lane 0 = w2a applied to z[:, :H], lane 1 = w2b applied to z[:, H:], rest 0.
    q_ref[...] = (jnp.dot(z, w2_ref[...], preferred_element_type=jnp.float32)
                  + b2_ref[...]).astype(q_ref.dtype)           # (TB, OUT_PAD)


# ---------------------------------------------------------------------------
# Parameter fusion / packing (done once, outside the per-step call)
# ---------------------------------------------------------------------------
def fuse_params(p, obs_dim, mm_dtype=jnp.float32):
    """Build fused / padded weights for the kernel from the per-layer params."""
    H = p["w1a"].shape[0]

    w0_obs = p["w0"][:obs_dim, :]                              # (obs_dim, H)
    w0_act = p["w0"][obs_dim:, :]                              # (act_dim, H)

    w1 = jnp.concatenate([p["w1a"], p["w1b"]], axis=1)         # (H, 2H)
    b1 = jnp.concatenate([p["b1a"], p["b1b"]], axis=1)         # (1, 2H)

    w2 = jnp.zeros((2 * H, OUT_PAD), jnp.float32)
    w2 = w2.at[:H, 0:1].set(p["w2a"])
    w2 = w2.at[H:, 1:2].set(p["w2b"])                          # (2H, OUT_PAD)
    b2 = jnp.zeros((1, OUT_PAD), jnp.float32)
    b2 = b2.at[0, 0].set(p["b2a"][0, 0])
    b2 = b2.at[0, 1].set(p["b2b"][0, 0])

    return dict(
        # matmul weights in the compute dtype (bf16 halves DMA bytes, f32 acc kept)
        w0_obs=w0_obs.astype(mm_dtype),
        w0_act=w0_act.astype(mm_dtype),
        w1=w1.astype(mm_dtype),
        w2=w2.astype(mm_dtype),
        # biases / LayerNorm affine stay f32 (added to f32 accumulators)
        b0=p["b0"].astype(jnp.float32),
        ln_g=p["ln_g"].astype(jnp.float32),
        ln_b=p["ln_b"].astype(jnp.float32),
        b1=b1.astype(jnp.float32),
        b2=b2,
    )


# ---------------------------------------------------------------------------
# Wrapper
# ---------------------------------------------------------------------------
def critic_forward(obs, action, fp, *, block_b=512):
    B, obs_dim = obs.shape
    act_dim = action.shape[1]
    mm_dtype = fp["w1"].dtype

    obs = obs.astype(mm_dtype)
    action = action.astype(mm_dtype)

    # Batch tile: whole batch for small B, otherwise block_b rows per grid step.
    tb = B if B <= block_b else block_b
    grid = (pl.cdiv(B, tb),)

    row_map = lambda i: (i, 0)      # activations / output: tile over rows
    const_map = lambda i: (0, 0)    # weights / biases: VMEM-resident across steps

    in_specs = [
        pl.BlockSpec((tb, obs_dim), row_map),
        pl.BlockSpec((tb, act_dim), row_map),
        pl.BlockSpec(fp["w0_obs"].shape, const_map),
        pl.BlockSpec(fp["w0_act"].shape, const_map),
        pl.BlockSpec(fp["b0"].shape, const_map),
        pl.BlockSpec(fp["ln_g"].shape, const_map),
        pl.BlockSpec(fp["ln_b"].shape, const_map),
        pl.BlockSpec(fp["w1"].shape, const_map),
        pl.BlockSpec(fp["b1"].shape, const_map),
        pl.BlockSpec(fp["w2"].shape, const_map),
        pl.BlockSpec(fp["b2"].shape, const_map),
    ]
    out_specs = pl.BlockSpec((tb, OUT_PAD), row_map)

    q = pl.pallas_call(
        critic_kernel,
        grid=grid,
        in_specs=in_specs,
        out_specs=out_specs,
        out_shape=jax.ShapeDtypeStruct((B, OUT_PAD), jnp.float32),
        compiler_params=pltpu.CompilerParams(
            dimension_semantics=("parallel",)),   # megacore sharding on v7x
    )(obs, action,
      fp["w0_obs"], fp["w0_act"], fp["b0"], fp["ln_g"], fp["ln_b"],
      fp["w1"], fp["b1"], fp["w2"], fp["b2"])

    # cheap glue: split the lane-dense slab into the two (B, 1) Q values
    return q[:, 0:1], q[:, 1:2]


# ---------------------------------------------------------------------------
# Parameters + pure-JAX reference (mirrors the PyTorch module exactly)
# ---------------------------------------------------------------------------
def make_params(key, obs_dim, action_dim, hidden_dim):
    d_in = obs_dim + action_dim
    ks = jax.random.split(key, 8)
    scale = 0.1

    def lin(k, fan_in, fan_out):
        kw, kb = jax.random.split(k)
        w = scale * jax.random.normal(kw, (fan_in, fan_out), jnp.float32)
        b = scale * jax.random.normal(kb, (1, fan_out), jnp.float32)
        return w, b

    w0, b0 = lin(ks[0], d_in, hidden_dim)
    ln_g = jnp.ones((1, hidden_dim), jnp.float32)
    ln_b = jnp.zeros((1, hidden_dim), jnp.float32)
    w1a, b1a = lin(ks[1], hidden_dim, hidden_dim)
    w2a, b2a = lin(ks[2], hidden_dim, 1)
    w1b, b1b = lin(ks[3], hidden_dim, hidden_dim)
    w2b, b2b = lin(ks[4], hidden_dim, 1)
    return dict(w0=w0, b0=b0, ln_g=ln_g, ln_b=ln_b,
                w1a=w1a, b1a=b1a, w2a=w2a, b2a=b2a,
                w1b=w1b, b1b=b1b, w2b=w2b, b2b=b2b)


def critic_reference(obs, action, p):
    x = jnp.concatenate([obs, action], axis=-1)
    h = x @ p["w0"] + p["b0"]
    mean = jnp.mean(h, axis=-1, keepdims=True)
    var = jnp.mean((h - mean) ** 2, axis=-1, keepdims=True)
    h = (h - mean) / jnp.sqrt(var + 1e-5) * p["ln_g"] + p["ln_b"]
    h = jnp.tanh(h)
    z1 = jnp.maximum(h @ p["w1a"] + p["b1a"], 0.0)
    q1 = z1 @ p["w2a"] + p["b2a"]
    z2 = jnp.maximum(h @ p["w1b"] + p["b1b"], 0.0)
    q2 = z2 @ p["w2b"] + p["b2b"]
    return q1, q2


if __name__ == "__main__":
    obs_dim, action_dim, hidden_dim = 24, 8, 32

    key = jax.random.PRNGKey(0)
    k_obs, k_act, k_par, k_obs2, k_act2 = jax.random.split(key, 5)
    params = make_params(k_par, obs_dim, action_dim, hidden_dim)

    # ---- path 1: small inference batch (multiple of 8 sublanes), f32, strict ----
    B1 = 8
    obs1 = jax.random.normal(k_obs, (B1, obs_dim), jnp.float32)
    act1 = jax.random.normal(k_act, (B1, action_dim), jnp.float32)
    fp_f32 = fuse_params(params, obs_dim, mm_dtype=jnp.float32)

    q1, q2 = critic_forward(obs1, act1, fp_f32)
    jax.block_until_ready((q1, q2))

    q1_ref, q2_ref = critic_reference(obs1, act1, params)
    assert q1.shape == (B1, 1) and q2.shape == (B1, 1)
    assert jnp.allclose(q1, q1_ref, rtol=1e-4, atol=1e-4)
    assert jnp.allclose(q2, q2_ref, rtol=1e-4, atol=1e-4)

    # ---- path 2: larger batch, batch-tiled grid + bf16 matmuls, loose tolerance ----
    B2, TB = 256, 64
    obs2 = jax.random.normal(k_obs2, (B2, obs_dim), jnp.float32)
    act2 = jax.random.normal(k_act2, (B2, action_dim), jnp.float32)
    fp_bf16 = fuse_params(params, obs_dim, mm_dtype=jnp.bfloat16)

    q1b, q2b = critic_forward(obs2, act2, fp_bf16, block_b=TB)
    jax.block_until_ready((q1b, q2b))

    q1b_ref, q2b_ref = critic_reference(obs2, act2, params)
    assert q1b.shape == (B2, 1) and q2b.shape == (B2, 1)
    assert jnp.allclose(q1b, q1b_ref, rtol=5e-2, atol=2e-2)
    assert jnp.allclose(q2b, q2b_ref, rtol=5e-2, atol=2e-2)

    print("KERNEL_OK")
</pallas_src>

<mosaic_0001>
module attributes {stable_mosaic.version = 11 : i64} {
  func.func @critic_kernel(%arg0: i32, %arg1: memref<8x24xf32, #tpu.memory_space<vmem>>, %arg2: memref<8x8xf32, #tpu.memory_space<vmem>>, %arg3: memref<24x32xf32, #tpu.memory_space<vmem>>, %arg4: memref<8x32xf32, #tpu.memory_space<vmem>>, %arg5: memref<1x32xf32, #tpu.memory_space<vmem>>, %arg6: memref<1x32xf32, #tpu.memory_space<vmem>>, %arg7: memref<1x32xf32, #tpu.memory_space<vmem>>, %arg8: memref<32x64xf32, #tpu.memory_space<vmem>>, %arg9: memref<1x64xf32, #tpu.memory_space<vmem>>, %arg10: memref<64x128xf32, #tpu.memory_space<vmem>>, %arg11: memref<1x128xf32, #tpu.memory_space<vmem>>, %arg12: memref<8x128xf32, #tpu.memory_space<vmem>>) attributes {dimension_semantics = [#tpu.dimension_semantics<parallel>], iteration_bounds = array<i64: 1>, scalar_prefetch = 0 : i64, scratch_operands = 0 : i64, tpu.core_type = #tpu.core_type<tc>, window_params = [{transform_indices = @transform_0, window_bounds = array<i64: 8, 24>}, {transform_indices = @transform_1, window_bounds = array<i64: 8, 8>}, {pipeline_mode = #tpu.pipeline_mode<synchronous>, transform_indices = @transform_2, window_bounds = array<i64: 24, 32>}, {pipeline_mode = #tpu.pipeline_mode<synchronous>, transform_indices = @transform_3, window_bounds = array<i64: 8, 32>}, {pipeline_mode = #tpu.pipeline_mode<synchronous>, transform_indices = @transform_4, window_bounds = array<i64: 1, 32>}, {pipeline_mode = #tpu.pipeline_mode<synchronous>, transform_indices = @transform_5, window_bounds = array<i64: 1, 32>}, {pipeline_mode = #tpu.pipeline_mode<synchronous>, transform_indices = @transform_6, window_bounds = array<i64: 1, 32>}, {pipeline_mode = #tpu.pipeline_mode<synchronous>, transform_indices = @transform_7, window_bounds = array<i64: 32, 64>}, {pipeline_mode = #tpu.pipeline_mode<synchronous>, transform_indices = @transform_8, window_bounds = array<i64: 1, 64>}, {pipeline_mode = #tpu.pipeline_mode<synchronous>, transform_indices = @transform_9, window_bounds = array<i64: 64, 128>}, {pipeline_mode = #tpu.pipeline_mode<synchronous>, transform_indices = @transform_10, window_bounds = array<i64: 1, 128>}, {transform_indices = @transform_11, window_bounds = array<i64: 8, 128>}]} {
    %c0 = arith.constant 0 : index
    %c0_0 = arith.constant 0 : index
    %0 = vector.load %arg1[%c0, %c0_0] : memref<8x24xf32, #tpu.memory_space<vmem>>, vector<8x24xf32>
    %c0_1 = arith.constant 0 : index
    %c0_2 = arith.constant 0 : index
    %1 = vector.load %arg3[%c0_1, %c0_2] : memref<24x32xf32, #tpu.memory_space<vmem>>, vector<24x32xf32>
    %cst = arith.constant dense<0.000000e+00> : vector<8x32xf32>
    %2 = tpu.matmul %0, %1, %cst {dimension_numbers = #tpu.dot_dimension_numbers<[1], [0], [0], [1], [0, 0, 1, 1], [], []>} : vector<8x24xf32>, vector<24x32xf32>, vector<8x32xf32> -> vector<8x32xf32>
    %c0_3 = arith.constant 0 : index
    %c0_4 = arith.constant 0 : index
    %3 = vector.load %arg2[%c0_3, %c0_4] : memref<8x8xf32, #tpu.memory_space<vmem>>, vector<8x8xf32>
    %c0_5 = arith.constant 0 : index
    %c0_6 = arith.constant 0 : index
    %4 = vector.load %arg4[%c0_5, %c0_6] : memref<8x32xf32, #tpu.memory_space<vmem>>, vector<8x32xf32>
    %cst_7 = arith.constant dense<0.000000e+00> : vector<8x32xf32>
    %5 = tpu.matmul %3, %4, %cst_7 {dimension_numbers = #tpu.dot_dimension_numbers<[1], [0], [0], [1], [0, 0, 1, 1], [], []>} : vector<8x8xf32>, vector<8x32xf32>, vector<8x32xf32> -> vector<8x32xf32>
    %6 = arith.addf %2, %5 : vector<8x32xf32>
    %c0_8 = arith.constant 0 : index
    %c0_9 = arith.constant 0 : index
    %7 = vector.load %arg5[%c0_8, %c0_9] : memref<1x32xf32, #tpu.memory_space<vmem>>, vector<1x32xf32>
    %8 = vector.broadcast %7 : vector<1x32xf32> to vector<8x32xf32>
    %9 = arith.addf %6, %8 : vector<8x32xf32>
    %cst_10 = arith.constant dense<0.000000e+00> : vector<8xf32>
    %10 = vector.multi_reduction <add>, %9, %cst_10 [1] : vector<8x32xf32> to vector<8xf32>
    %11 = vector.shape_cast %10 : vector<8xf32> to vector<8x1xf32>
    %cst_11 = arith.constant 3.200000e+01 : f32
    %12 = vector.broadcast %cst_11 : f32 to vector<8x1xf32>
    %13 = arith.divf %11, %12 : vector<8x1xf32>
    %14 = vector.broadcast %13 : vector<8x1xf32> to vector<8x32xf32>
    %15 = arith.subf %9, %14 : vector<8x32xf32>
    %16 = arith.mulf %15, %15 : vector<8x32xf32>
    %cst_12 = arith.constant dense<0.000000e+00> : vector<8xf32>
    %17 = vector.multi_reduction <add>, %16, %cst_12 [1] : vector<8x32xf32> to vector<8xf32>
    %18 = vector.shape_cast %17 : vector<8xf32> to vector<8x1xf32>
    %cst_13 = arith.constant 3.200000e+01 : f32
    %19 = vector.broadcast %cst_13 : f32 to vector<8x1xf32>
    %20 = arith.divf %18, %19 : vector<8x1xf32>
    %cst_14 = arith.constant 9.99999974E-6 : f32
    %21 = vector.broadcast %cst_14 : f32 to vector<8x1xf32>
    %22 = arith.addf %20, %21 : vector<8x1xf32>
    %23 = math.rsqrt %22 : vector<8x1xf32>
    %24 = vector.broadcast %23 : vector<8x1xf32> to vector<8x32xf32>
    %25 = arith.mulf %15, %24 : vector<8x32xf32>
    %c0_15 = arith.constant 0 : index
    %c0_16 = arith.constant 0 : index
    %26 = vector.load %arg6[%c0_15, %c0_16] : memref<1x32xf32, #tpu.memory_space<vmem>>, vector<1x32xf32>
    %27 = vector.broadcast %26 : vector<1x32xf32> to vector<8x32xf32>
    %28 = arith.mulf %25, %27 : vector<8x32xf32>
    %c0_17 = arith.constant 0 : index
    %c0_18 = arith.constant 0 : index
    %29 = vector.load %arg7[%c0_17, %c0_18] : memref<1x32xf32, #tpu.memory_space<vmem>>, vector<1x32xf32>
    %30 = vector.broadcast %29 : vector<1x32xf32> to vector<8x32xf32>
    %31 = arith.addf %28, %30 : vector<8x32xf32>
    %32 = math.tanh %31 : vector<8x32xf32>
    %c0_19 = arith.constant 0 : index
    %c0_20 = arith.constant 0 : index
    %33 = vector.load %arg8[%c0_19, %c0_20] : memref<32x64xf32, #tpu.memory_space<vmem>>, vector<32x64xf32>
    %cst_21 = arith.constant dense<0.000000e+00> : vector<8x64xf32>
    %34 = tpu.matmul %32, %33, %cst_21 {dimension_numbers = #tpu.dot_dimension_numbers<[1], [0], [0], [1], [0, 0, 1, 1], [], []>} : vector<8x32xf32>, vector<32x64xf32>, vector<8x64xf32> -> vector<8x64xf32>
    %c0_22 = arith.constant 0 : index
    %c0_23 = arith.constant 0 : index
    %35 = vector.load %arg9[%c0_22, %c0_23] : memref<1x64xf32, #tpu.memory_space<vmem>>, vector<1x64xf32>
    %36 = vector.broadcast %35 : vector<1x64xf32> to vector<8x64xf32>
    %37 = arith.addf %34, %36 : vector<8x64xf32>
    %cst_24 = arith.constant 0.000000e+00 : f32
    %38 = vector.broadcast %cst_24 : f32 to vector<8x64xf32>
    %39 = arith.maximumf %37, %38 : vector<8x64xf32>
    %c0_25 = arith.constant 0 : index
    %c0_26 = arith.constant 0 : index
    %40 = vector.load %arg10[%c0_25, %c0_26] : memref<64x128xf32, #tpu.memory_space<vmem>>, vector<64x128xf32>
    %cst_27 = arith.constant dense<0.000000e+00> : vector<8x128xf32>
    %41 = tpu.matmul %39, %40, %cst_27 {dimension_numbers = #tpu.dot_dimension_numbers<[1], [0], [0], [1], [0, 0, 1, 1], [], []>} : vector<8x64xf32>, vector<64x128xf32>, vector<8x128xf32> -> vector<8x128xf32>
    %c0_28 = arith.constant 0 : index
    %c0_29 = arith.constant 0 : index
    %42 = vector.load %arg11[%c0_28, %c0_29] : memref<1x128xf32, #tpu.memory_space<vmem>>, vector<1x128xf32>
    %43 = vector.broadcast %42 : vector<1x128xf32> to vector<8x128xf32>
    %44 = arith.addf %41, %43 : vector<8x128xf32>
    %c0_30 = arith.constant 0 : index
    %c0_31 = arith.constant 0 : index
    %45 = vector.load %arg12[%c0_30, %c0_31] : memref<8x128xf32, #tpu.memory_space<vmem>>, vector<8x128xf32>
    tpu.vector_store %arg12[%c0_30, %c0_31], %44 {strides = array<i32>} : memref<8x128xf32, #tpu.memory_space<vmem>>, vector<8x128xf32>,
    return
  }
  func.func @transform_0(%arg0: i32) -> (i32, i32) {
    %c0_i32 = arith.constant 0 : i32
    %c0_i32_0 = arith.constant 0 : i32
    return %arg0, %c0_i32 : i32, i32
  }
  func.func @transform_1(%arg0: i32) -> (i32, i32) {
    %c0_i32 = arith.constant 0 : i32
    %c0_i32_0 = arith.constant 0 : i32
    return %arg0, %c0_i32 : i32, i32
  }
  func.func @transform_2(%arg0: i32) -> (i32, i32) {
    %c0_i32 = arith.constant 0 : i32
    %c0_i32_0 = arith.constant 0 : i32
    %c0_i32_1 = arith.constant 0 : i32
    return %c0_i32, %c0_i32_0 : i32, i32
  }
  func.func @transform_3(%arg0: i32) -> (i32, i32) {
    %c0_i32 = arith.constant 0 : i32
    %c0_i32_0 = arith.constant 0 : i32
    %c0_i32_1 = arith.constant 0 : i32
    return %c0_i32, %c0_i32_0 : i32, i32
  }
  func.func @transform_4(%arg0: i32) -> (i32, i32) {
    %c0_i32 = arith.constant 0 : i32
    %c0_i32_0 = arith.constant 0 : i32
    %c0_i32_1 = arith.constant 0 : i32
    return %c0_i32, %c0_i32_0 : i32, i32
  }
  func.func @transform_5(%arg0: i32) -> (i32, i32) {
    %c0_i32 = arith.constant 0 : i32
    %c0_i32_0 = arith.constant 0 : i32
    %c0_i32_1 = arith.constant 0 : i32
    return %c0_i32, %c0_i32_0 : i32, i32
  }
  func.func @transform_6(%arg0: i32) -> (i32, i32) {
    %c0_i32 = arith.constant 0 : i32
    %c0_i32_0 = arith.constant 0 : i32
    %c0_i32_1 = arith.constant 0 : i32
    return %c0_i32, %c0_i32_0 : i32, i32
  }
  func.func @transform_7(%arg0: i32) -> (i32, i32) {
    %c0_i32 = arith.constant 0 : i32
    %c0_i32_0 = arith.constant 0 : i32
    %c0_i32_1 = arith.constant 0 : i32
    return %c0_i32, %c0_i32_0 : i32, i32
  }
  func.func @transform_8(%arg0: i32) -> (i32, i32) {
    %c0_i32 = arith.constant 0 : i32
    %c0_i32_0 = arith.constant 0 : i32
    %c0_i32_1 = arith.constant 0 : i32
    return %c0_i32, %c0_i32_0 : i32, i32
  }
  func.func @transform_9(%arg0: i32) -> (i32, i32) {
    %c0_i32 = arith.constant 0 : i32
    %c0_i32_0 = arith.constant 0 : i32
    %c0_i32_1 = arith.constant 0 : i32
    return %c0_i32, %c0_i32_0 : i32, i32
  }
  func.func @transform_10(%arg0: i32) -> (i32, i32) {
    %c0_i32 = arith.constant 0 : i32
    %c0_i32_0 = arith.constant 0 : i32
    %c0_i32_1 = arith.constant 0 : i32
    return %c0_i32, %c0_i32_0 : i32, i32
  }
  func.func @transform_11(%arg0: i32) -> (i32, i32) {
    %c0_i32 = arith.constant 0 : i32
    %c0_i32_0 = arith.constant 0 : i32
    return %arg0, %c0_i32 : i32, i32
  }
}

</mosaic_0001>

<bundles_post_ra>
// kernel: tpu_custom_call.1
= control target key start
LH: loop header
LB: loop body
LE: loop exit
PB: predicated region body
PF: predicated region fallthrough
CT: control target
= control target key end

     0   :  { %16 = vsyncpa [#allocation3], 0  ;;  %s915_s0 = inlined_call_operand.hbm [shape: f32[8,24], index: 0, kind: input, shape index: {}]   ;;  %s916_s1 = inlined_call_operand.hbm [shape: f32[8,8], index: 1, kind: input, shape index: {}]   ;;  %s917_s2 = inlined_call_operand.hbm [shape: f32[24,32], index: 2, kind: input, shape index: {}]   ;;  %s918_s3 = inlined_call_operand.vmem [shape: f32[8,32], index: 3, kind: input, shape index: {}]   ;;  %s919_s4 = inlined_call_operand.vmem [shape: f32[1,32], index: 4, kind: input, shape index: {}]   ;;  %s920_s5 = inlined_call_operand.vmem [shape: f32[1,32], index: 5, kind: input, shape index: {}]   ;;  %s921_s6 = inlined_call_operand.vmem [shape: f32[1,32], index: 6, kind: input, shape index: {}]   ;;  %s922_s7 = inlined_call_operand.hbm [shape: f32[32,64], index: 7, kind: input, shape index: {}]   ;;  %s923_s8 = inlined_call_operand.vmem [shape: f32[1,64], index: 8, kind: input, shape index: {}]   ;;  %s924_s9 = inlined_call_operand.hbm [shape: f32[64,128], index: 9, kind: input, shape index: {}]   ;;  %s925_s10 = inlined_call_operand.vmem [shape: f32[1,128], index: 10, kind: input, shape index: {}]   ;;  %s926_s11 = inlined_call_operand.hbm [shape: f32[8,128], index: 11, kind: output, shape index: {}]  }
   0x1   :  { %17 = vsyncpa [#allocation6], 0 }
   0x2   :  { %18 = vsyncpa [#allocation9], 0 }
   0x3   :  { %19 = vsyncpa [#allocation4], 0  ;;  %s738_s17 = smov [#allocation5]   ;;  %s598_s21 = scalar_lea.hbm %s916_s1, 128 }
   0x4   :  { %s36_s18 = sshll.u32 %s738_s17, 4  ;;  %p599_p0 = scmp.ne.s32.totalorder %s916_s1, %s598_s21  ;;  %s37_s18 = int_to_ptr.vmem [resolvable:$true] %s36_s18 }
   0x5   :  { %p602_p1 = scmp.lt.u32.totalorder %s598_s21, %s916_s1 }
   0x7   :  { %p604_p2 = pnand %p602_p1, %p599_p0 }
   0x9   :  { %607 = shalt.err (!%p604_p2)
}
   0xa   :  { %s608_s26 = scalar_lea.vmem %s37_s18, 128  ;;  %p613_p4 = scmp.lt.s32.totalorder %s37_s18, %s37_s18 }
   0xb   :  { %p609_p3 = scmp.ne.s32.totalorder %s37_s18, %s608_s26  ;;  %p614_p5 = scmp.lt.s32.totalorder %s608_s26, %s608_s26 }
   0xd   :  { %p615_p6 = por %p614_p5, %p613_p4 }
   0xf   :  { %p616_p7 = pnand %p615_p6, %p609_p3 }
  0x11   :  { %619 = shalt.err (!%p616_p7)
}
  0x12   :  { %39 = dma.hbm_to_vmem [thread:$0]  %s916_s1, 128, %s37_s18, [#allocation6]  }
  0x13   :  { %s739_s29 = smov [#allocation8]   ;;  %s740_s12 = smov [#allocation2]  }
  0x14   :  { %s65_s30 = sshll.u32 %s739_s29, 4  ;;  %s26_s13 = sshll.u32 %s740_s12, 4  ;;  %s66_s30 = int_to_ptr.vmem [resolvable:$true] %s65_s30  ;;  %s27_s13 = int_to_ptr.vmem [resolvable:$true] %s26_s13 }
  0x15   :  { %s620_s16 = scalar_lea.hbm %s922_s7, 512 }
  0x16   :  { %p621_p8 = scmp.ne.s32.totalorder %s922_s7, %s620_s16  ;;  %p624_p9 = scmp.lt.u32.totalorder %s620_s16, %s922_s7 }
  0x18   :  { %p626_p10 = pnand %p624_p9, %p621_p8 }
  0x1a   :  { %629 = shalt.err (!%p626_p10)
}
  0x1b   :  { %s630_s1 = scalar_lea.vmem %s66_s30, 512  ;;  %p635_p12 = scmp.lt.s32.totalorder %s66_s30, %s66_s30 }
  0x1c   :  { %p631_p11 = scmp.ne.s32.totalorder %s66_s30, %s630_s1  ;;  %p636_p13 = scmp.lt.s32.totalorder %s630_s1, %s630_s1 }
  0x1e   :  { %p637_p0 = por %p636_p13, %p635_p12 }
  0x20   :  { %p638_p1 = pnand %p637_p0, %p631_p11 }
  0x22   :  { %641 = shalt.err (!%p638_p1)
}
  0x23   :  { %s741_s18 = smov 128   ;;  %s742_s22 = smov 8  }
  0x24   :  { %71 = dma.hbm_to_vmem [thread:$0]  %s922_s7, 512, %s66_s30, [#allocation9], %s741_s18, %s741_s18, %s742_s22  }
  0x25   :  { %s642_s27 = scalar_lea.hbm %s915_s0, 128 }
  0x26   :  { %p643_p2 = scmp.ne.s32.totalorder %s915_s0, %s642_s27  ;;  %p646_p3 = scmp.lt.u32.totalorder %s642_s27, %s915_s0 }
  0x28   :  { %p648_p4 = pnand %p646_p3, %p643_p2 }
  0x2a   :  { %651 = shalt.err (!%p648_p4)
}
  0x2b   :  { %s652_s15 = scalar_lea.vmem %s27_s13, 128  ;;  %p657_p6 = scmp.lt.s32.totalorder %s27_s13, %s27_s13 }
  0x2c   :  { %p653_p5 = scmp.ne.s32.totalorder %s27_s13, %s652_s15  ;;  %p658_p7 = scmp.lt.s32.totalorder %s652_s15, %s652_s15 }
  0x2e   :  { %p659_p8 = por %p658_p7, %p657_p6 }
  0x30   :  { %p660_p9 = pnand %p659_p8, %p653_p5 }
  0x32   :  { %663 = shalt.err (!%p660_p9)
}
  0x33   :  { %29 = dma.hbm_to_vmem [thread:$0]  %s915_s0, 128, %s27_s13, [#allocation3]  }
  0x34   :  { %s743_s16 = smov [#allocation7]   ;;  %s744_s19 = smov [#allocation10]  }
  0x35   :  { %s45_s17 = sshll.u32 %s743_s16, 4  ;;  %s79_s20 = sshll.u32 %s744_s19, 4  ;;  %s46_s17 = int_to_ptr.vmem [resolvable:$true] %s45_s17  ;;  %s80_s20 = int_to_ptr.vmem [resolvable:$true] %s79_s20 }
  0x36   :  { %s664_s23 = scalar_lea.hbm %s917_s2, 384 }
  0x37   :  { %p665_p10 = scmp.ne.s32.totalorder %s917_s2, %s664_s23  ;;  %p668_p11 = scmp.lt.u32.totalorder %s664_s23, %s917_s2 }
  0x39   :  { %p670_p12 = pnand %p668_p11, %p665_p10 }
  0x3b   :  { %673 = shalt.err (!%p670_p12)
}
  0x3c   :  { %s674_s0 = scalar_lea.vmem %s46_s17, 384  ;;  %p679_p0 = scmp.lt.s32.totalorder %s46_s17, %s46_s17 }
  0x3d   :  { %p675_p13 = scmp.ne.s32.totalorder %s46_s17, %s674_s0  ;;  %p680_p1 = scmp.lt.s32.totalorder %s674_s0, %s674_s0 }
  0x3f   :  { %p681_p2 = por %p680_p1, %p679_p0 }
  0x41   :  { %p682_p3 = pnand %p681_p2, %p675_p13 }
  0x43   :  { %685 = shalt.err (!%p682_p3)
}
  0x44   :  { %51 = dma.hbm_to_vmem [thread:$0]  %s917_s2, 384, %s46_s17, [#allocation6], %s741_s18, %s741_s18, %s742_s22  }
  0x45   :  { %s686_s14 = scalar_lea.hbm %s924_s9, 1024 }
  0x46   :  { %p687_p4 = scmp.ne.s32.totalorder %s924_s9, %s686_s14  ;;  %p690_p5 = scmp.lt.u32.totalorder %s686_s14, %s924_s9 }
  0x48   :  { %p692_p6 = pnand %p690_p5, %p687_p4 }
  0x4a   :  { %695 = shalt.err (!%p692_p6)
}
  0x4b   :  { %s696_s19 = scalar_lea.vmem %s80_s20, 1024  ;;  %p701_p8 = scmp.lt.s32.totalorder %s80_s20, %s80_s20 }
  0x4c   :  { %p697_p7 = scmp.ne.s32.totalorder %s80_s20, %s696_s19  ;;  %p702_p9 = scmp.lt.s32.totalorder %s696_s19, %s696_s19 }
  0x4e   :  { %p703_p10 = por %p702_p9, %p701_p8 }
  0x50   :  { %p704_p11 = pnand %p703_p10, %p697_p7 }
  0x52   :  { %707 = shalt.err (!%p704_p11)
}
  0x53   :  { %85 = dma.hbm_to_vmem [thread:$0]  %s924_s9, 1024, %s80_s20, [#allocation9], %s741_s18, %s741_s18, %s742_s22  }
  0x54   :  { %730 = dma.done.wait [#allocation3], 128  }
  0x55   :  { %731 = vsyncadd [#allocation3], 4294967168 }
  0x56   :  { %732 = dma.done.wait [#allocation6], 512  }
  0x57   :  { %733 = vsyncadd [#allocation6], 4294966784 }
  0x58   :  { %734 = dma.done.wait [#allocation9], 1536  }
  0x59   :  { %735 = vsyncadd [#allocation9], 4294965760  ;;  %v745_v0 = vmov 0.0   ;;  %vm746_vm0 = vmmov 0   ;;  %v747_v1 = vmov 0.0|0.0   ;;  %vm109_vm1 = vcmask 64512  }
  0x5a   :  { %518 = vmatprep.subr.mxu0 %v745_v0  ;;  %520 = vmatprep.mubr.msk.f32.mxu0 %vm746_vm0, %v745_v0  ;;  %v108_v2 = vld [vmem:[%s918_s3] sm:$0xff]  ;;  %v107_v3 = vld [vmem:[#allocation5] sm:$0xff]  ;;  %v104_v4 = vld [vmem:[#allocation7] sm:$0xff]  ;;  %vm183_vm2 = vcmask 195584   ;;  %vm265_vm3 = vcmask 261120   ;;  %vm397_vm4 = vcmask 523264  }
  0x5b   :  { %571 = vmatprep.subr.bf16.mxu1 %v747_v1  ;;  %559 = vmatprep.mubr.msk.f32.mxu1 %vm746_vm0, %v745_v0  ;;  %v105_v5 = vld [vmem:[#allocation7 + $0x8] sm:$0xff]  ;;  %v106_v7 = vld [vmem:[#allocation7 + $0x10] sm:$0xff]  ;;  %v297_v22 = vld [vmem:[#allocation8] sm:$0xff]  ;;  %s748_s25 = smov [#allocation11]  }
  0x5c   :  { %519 = vmatpush3.msra.mxu0 %v108_v2  ;;  %v563_v6 = vpack.c.bf16 %v105_v5, %v104_v4  ;;  %v103_v8 = vld [vmem:[#allocation2] sm:$0xff]  ;;  %v298_v23 = vld [vmem:[#allocation8 + $0x8] sm:$0xff]  ;;  %v299_v24 = vld [vmem:[#allocation8 + $0x10] sm:$0xff]  ;;  %s478_s26 = sshll.u32 %s748_s25, 4  ;;  %s479_s26 = int_to_ptr.vmem [resolvable:$true] %s478_s26 }
  0x5d   :  { %521 = vmatmul.mubr.msk.f32.vlgmr.msra.gmra.mrb[0].mxu0 %vm109_vm1, %v107_v3  ;;  %562 = vmatprep.subr.bf16.mxu0 %v747_v1  ;;  %v491_v12 = vld [vmem:[%s919_s4] ss:$0 sm:$0xff]  ;;  %v566_v25 = vpack.c.bf16 %v298_v23, %v297_v22  ;;  %v382_v28 = vld [vmem:[#allocation10] sm:$0xff]  ;;  %v383_v29 = vld [vmem:[#allocation10 + $0x8] sm:$0xff]  ;;  %s708_s27 = scalar_lea.vmem %s479_s26, 128  ;;  %p713_p13 = scmp.lt.s32.totalorder %s479_s26, %s479_s26 }
  0x5e   :  { %529 = vmatprep.mubr.msk.f32.mxu0 %vm746_vm0, %v745_v0  ;;  %564 = vmatpush3.bf16.msra.mxu0 %v563_v6  ;;  %v300_v26 = vld [vmem:[#allocation8 + $0x18] sm:$0xff]  ;;  %v384_v30 = vld [vmem:[#allocation10 + $0x10] sm:$0xff]  ;;  %v572_v31 = vpack.c.bf16 %v383_v29, %v382_v28  ;;  %v386_v34 = vld [vmem:[#allocation10 + $0x20] sm:$0xff]  ;;  %p709_p12 = scmp.ne.s32.totalorder %s479_s26, %s708_s27  ;;  %p714_p0 = scmp.lt.s32.totalorder %s708_s27, %s708_s27 }
  0x5f   :  { %527 = vmatprep.subr.mxu0 %v745_v0  ;;  %v569_v27 = vpack.c.bf16 %v300_v26, %v299_v24  ;;  %v385_v32 = vld [vmem:[#allocation10 + $0x18] sm:$0xff]  ;;  %v387_v35 = vld [vmem:[#allocation10 + $0x28] sm:$0xff]  ;;  %v388_v47 = vld [vmem:[#allocation10 + $0x30] sm:$0xff] }
  0x60   :  { %573 = vmatpush3.bf16.msra.mxu1 %v572_v31  ;;  %v575_v33 = vpack.c.bf16 %v385_v32, %v384_v30  ;;  %v578_v36 = vpack.c.bf16 %v387_v35, %v386_v34  ;;  %v492_v41 = vld [vmem:[%s920_s5] ss:$0 sm:$0xff]  ;;  %p715_p1 = por %p714_p0, %p713_p13 }
  0x61   :  { %574 = vmatprep.subr.bf16.mxu1 %v747_v1  ;;  %v493_v43 = vld [vmem:[%s921_s6] ss:$0 sm:$0xff] }
  0x62   :  { %528 = vmatpush3.msra.mxu0 %v106_v7  ;;  %v389_v48 = vld [vmem:[#allocation10 + $0x38] sm:$0xff]  ;;  %p716_p2 = pnand %p715_p1, %p709_p12 }
  0x63   :  { %530 = vmatmul.mubr.msk.f32.vlgmr.msra.gmra.mrb[2].mxu0 %vm183_vm2, %v103_v8  ;;  %565 = vmatprep.subr.bf16.mxu0 %v747_v1  ;;  %v581_v49 = vpack.c.bf16 %v389_v48, %v388_v47  ;;  %v494_v50 = vld [vmem:[%s923_s8] ss:$0 sm:$0xff] }
  0x64   :  { %540 = vmatprep.mubr.msk.f32.mxu0 %vm746_vm0, %v745_v0  ;;  %567 = vmatpush3.bf16.msra.mxu0 %v566_v25  ;;  %v496_v55 = vld [vmem:[%s925_s10] ss:$0 sm:$0xff] }
  0x65   :  { %568 = vmatprep.subr.bf16.mxu0 %v747_v1  ;;  %576 = vmatpush3.bf16.msra.mxu1 %v575_v33 }
  0x66   :  { %577 = vmatprep.subr.bf16.mxu1 %v747_v1 }
  0x68   :  { %570 = vmatpush3.bf16.msra.mxu0 %v569_v27 }
  0x69   :  { %579 = vmatpush3.bf16.msra.mxu1 %v578_v36 }
  0x6a   :  { %580 = vmatprep.subr.bf16.mxu1 %v747_v1 }
  0x6d   :  { %582 = vmatpush3.bf16.msra.mxu1 %v581_v49 }
 0x130   :  { %v179_v9 = vpop.f32.mrb[0].mxu0 }
 0x131   :  { %v522_v10 = vpop.f32.mrb[1].mxu0 }
 0x136   :  { %v253_v11 = vpop.f32.mrb[2].mxu0 }
 0x137   :  { %v254_v13 = vadd.f32 %v253_v11, %v179_v9  ;;  %v531_v14 = vpop.f32.mrb[3].mxu0 }
 0x139   :  { %v264_v15 = vadd.f32 %v491_v12, %v254_v13 }
 0x13b   :  { %v266_v16 = vsel %vm265_vm3, %v264_v15, 0.0 }
 0x13c   :  { %267 = vadd.xlane.f32.xlu0 %v266_v16 }
 0x1c9   :  { %v268_v17 = vpop.xlane.xlu0 %267 }
 0x1ca   :  { %v270_v18 = vmul.f32 0.03125, %v268_v17 }
 0x1cc   :  { %v271_v19 = vsub.f32 %v264_v15, %v270_v18 }
 0x1ce   :  { %v272_v20 = vmul.f32 %v271_v19, %v271_v19 }
 0x1d0   :  { %v273_v21 = vsel %vm265_vm3, %v272_v20, 0.0 }
 0x1d1   :  { %274 = vadd.xlane.f32.xlu0 %v273_v21 }
 0x25e   :  { %v275_v37 = vpop.xlane.xlu0 %274 }
 0x25f   :  { %v276_v38 = vmul.f32 0.03125, %v275_v37 }
 0x261   :  { %v277_v39 = vadd.f32 1e-05, %v276_v38 }
 0x263   :  { %594 = vrsqrt.f32 %v277_v39 }
 0x26d   :  { %v595_v40 = vpop.eup %594 }
 0x26e   :  { %v279_v42 = vmul.f32 %v595_v40, %v271_v19 }
 0x270   :  { %v287_v44 = vmul.f32 %v492_v41, %v279_v42 }
 0x272   :  { %v295_v45 = vadd.f32 %v493_v43, %v287_v44 }
 0x274   :  { %596 = vtanh.f32 %v295_v45 }
 0x27e   :  { %v597_v46 = vpop.eup %596 }
 0x27f   :  { %541 = vmatmul.mubr.msk.f32.vlgmr.msra.gmra.mrb[4].mxu0 %vm265_vm3, %v597_v46 }
 0x352   :  { %v377_v51 = vpop.f32.mrb[4].mxu0 }
 0x353   :  { %v378_v52 = vadd.f32 %v494_v50, %v377_v51  ;;  %v542_v53 = vpop.f32.mrb[5].mxu0 }
 0x355   :  { %v381_v54 = vmax.f32 %v378_v52, 0.0 }
 0x357   :  { %560 = vmatmul.mubr.msk.f32.vlgmr.msra.gmra.mrb[0].mxu1 %vm397_vm4, %v381_v54 }
 0x42a   :  { %v467_v56 = vpop.f32.mrb[0].mxu1 }
 0x42b   :  { %v468_v57 = vadd.f32 %v496_v55, %v467_v56  ;;  %v561_v58 = vpop.f32.mrb[1].mxu1 }
 0x42d   :  { %471 = vst [vmem:[#allocation11] sm:$0xff] %v468_v57 }
 0x42e   :  { %719 = shalt.err (!%p716_p2)
}
 0x42f   :  { %s720_s13 = scalar_lea.hbm %s926_s11, 128 }
 0x430   :  { %p721_p3 = scmp.ne.s32.totalorder %s926_s11, %s720_s13  ;;  %p724_p4 = scmp.lt.u32.totalorder %s720_s13, %s926_s11 }
 0x432   :  { %p726_p5 = pnand %p724_p4, %p721_p3 }
 0x434   :  { %729 = shalt.err (!%p726_p5)
}
 0x435   :  { %481 = dma.vmem_to_hbm [thread:$0]  %s479_s26, 128, %s926_s11, [#allocation4]  }
 0x436   :  { %736 = dma.done.wait [#allocation4], 128  }
 0x437   :  { %737 = vsyncadd [#allocation4], 4294967168 }
 0x438   :  { %485 = vsyncpa [#allocation3], 1 }
 0x439   :  { %486 = vsyncpa [#allocation6], 1 }
 0x43a   :  { %487 = vsyncpa [#allocation9], 1 }
 0x43b   :  { %488 = vsyncpa [#allocation4], 1 }

</bundles_post_ra>
